<compile_context>
chip_gen: v5e
topology: v5e:2x2
jax: 0.10.0
libtpu: 0.0.40
codegen_flags: <defaults>
</compile_context>

<pallas_src>
import jax
import jax.numpy as jnp
from jax.experimental import pallas as pl
from jax.experimental.pallas import tpu as pltpu


# ----------------------------------------------------------------------------
# Pass A: attention scores, lane-dense (n_hop, L, N_pad)
# ----------------------------------------------------------------------------
def _make_score_kernel(L, attn_dim):
    def kernel(x_ref, wa_ref, scores_ref):
        x = x_ref[0]                                   # (sum_d, TN) bf16
        wa = wa_ref[0]                                 # ((L+1)A, sum_d) bf16
        # One MXU push: block-diagonal [K | Q_0 | ... | Q_{L-1}]^T @ x^T
        proj = jnp.dot(wa, x, preferred_element_type=jnp.float32)   # ((L+1)A, TN)
        ego = proj[:attn_dim]                                        # (A, TN)
        rows = []
        for i in range(L):
            qi = proj[(i + 1) * attn_dim:(i + 2) * attn_dim]         # (A, TN)
            rows.append(jnp.sum(ego * qi, axis=0, keepdims=True))    # (1, TN)
        scores_ref[0] = jnp.concatenate(rows, axis=0)                # (L, TN)
    return kernel


# ----------------------------------------------------------------------------
# Pass B: softmax over the L inputs (sublane reductions, no transpose) +
#         single weighted matmul out^T = V_cat^T @ (w-scaled x_cat)
# ----------------------------------------------------------------------------
def _make_combine_kernel(L, dims):
    def kernel(inv_ref, s_ref, x_ref, v_ref, out_ref):
        inv = inv_ref[0]                                             # 1/(max-min)
        s = s_ref[0] * inv                                           # (L, TN) f32
        m = jnp.max(s, axis=0, keepdims=True)                        # (1, TN)
        e = jnp.exp(s - m)                                           # (L, TN)
        den = jnp.sum(e, axis=0, keepdims=True)                      # (1, TN)
        w = e * pl.reciprocal(den, approx=True)                      # (L, TN)

        xf = x_ref[0].astype(jnp.float32)                            # (sum_d, TN)
        tn = xf.shape[1]
        # Fold softmax weights into the per-input feature slices (so ONE matmul
        # replaces L small ones); f32 elementwise, bf16 only on MXU operands.
        scale = jnp.concatenate(
            [jnp.broadcast_to(w[i:i + 1], (dims[i], tn)) for i in range(L)],
            axis=0)                                                  # (sum_d, TN)
        xw = (xf * scale).astype(jnp.bfloat16)                       # (sum_d, TN)
        out_ref[0] = jnp.dot(v_ref[0], xw,
                             preferred_element_type=jnp.float32
                             ).astype(out_ref.dtype)                 # (O, TN)
    return kernel


# ----------------------------------------------------------------------------
# Wrapper
# ----------------------------------------------------------------------------
def _blk_bytes(sublanes, lanes, dtype):
    """Padding-aware VMEM footprint of one (sublanes, lanes) block."""
    it = jnp.dtype(dtype).itemsize
    st = 8 * max(1, 4 // it)                       # 8 for f32, 16 for bf16
    pads = -(-sublanes // st) * st
    padl = -(-lanes // 128) * 128
    return pads * padl * it


def _halve_128(t):
    return max(128, (t // 2 // 128) * 128)


def combine_forward(xs, kproj, qprojs, vprojs, *, tile_n=2048):
    L = len(xs)
    n_hop, N, _ = xs[0].shape
    attn_dim = kproj.shape[-1]
    out_dim = vprojs[0].shape[-1]
    dims = [int(x.shape[-1]) for x in xs]
    sum_d = sum(dims)
    offs = [0]
    for d in dims[:-1]:
        offs.append(offs[-1] + d)

    # ---- tiling: 128-multiple lane tiles, pad N up to a tile multiple -------
    t = max(128, (min(tile_n, -(-N // 128) * 128) // 128) * 128)
    # v7x has 2 TensorCores: keep >= 2 total steps on the (parallel) grid.
    while n_hop * (-(-N // t)) < 2 and t > 128:
        t = _halve_128(t)

    # Padding-aware per-step VMEM (double-buffered blocks); keep headroom under
    # v7x's 32 MiB scoped default (64 MiB physical), v5e/v6e have 128 MiB.
    def _step_bytes(tn):
        pa = 2 * (_blk_bytes(sum_d, tn, jnp.bfloat16)
                  + _blk_bytes((L + 1) * attn_dim, sum_d, jnp.bfloat16)
                  + _blk_bytes(L, tn, jnp.float32))
        pb = 2 * (_blk_bytes(L, tn, jnp.float32)
                  + _blk_bytes(sum_d, tn, jnp.bfloat16)
                  + _blk_bytes(out_dim, sum_d, jnp.bfloat16)
                  + _blk_bytes(out_dim, tn, jnp.float32))
        return max(pa, pb)

    VMEM_BUDGET = 24 * 1024 * 1024
    while _step_bytes(t) > VMEM_BUDGET and t > 128:
        t = _halve_128(t)
    tile_n = t
    n_tiles = -(-N // tile_n)
    N_pad = n_tiles * tile_n
    grid = (n_hop, n_tiles)          # hop OUTER -> weight blocks stay resident

    # ---- one-time layout / weight prep (wrapper-side, outside the kernels) --
    wT = lambda a: jnp.swapaxes(a, 1, 2)
    x_cat = jnp.concatenate([wT(x) for x in xs], axis=1).astype(jnp.bfloat16)
    if N_pad > N:
        x_cat = jnp.pad(x_cat, ((0, 0), (0, 0), (0, N_pad - N)))    # zeros

    # Block-diagonal [K | Q_0 | ... | Q_{L-1}]^T : ((L+1)A, sum_d) per hop, bf16.
    wa = jnp.zeros((n_hop, (L + 1) * attn_dim, sum_d), jnp.float32)
    wa = wa.at[:, :attn_dim, :dims[0]].set(wT(kproj))
    for i in range(L):
        wa = wa.at[:, (i + 1) * attn_dim:(i + 2) * attn_dim,
                   offs[i]:offs[i] + dims[i]].set(wT(qprojs[i]))
    wa = wa.astype(jnp.bfloat16)

    # Column-stacked V^T : (out_dim, sum_d) per hop, bf16.
    vcat = jnp.concatenate([wT(v) for v in vprojs], axis=2).astype(jnp.bfloat16)

    cparams = pltpu.CompilerParams(
        dimension_semantics=("parallel", "parallel"),
        vmem_limit_bytes=32 * 1024 * 1024)

    # ---------------------------------- pass A -------------------------------
    scores = pl.pallas_call(
        _make_score_kernel(L, attn_dim),
        out_shape=jax.ShapeDtypeStruct((n_hop, L, N_pad), jnp.float32),
        grid_spec=pltpu.PrefetchScalarGridSpec(
            num_scalar_prefetch=0,
            grid=grid,
            in_specs=[
                pl.BlockSpec((1, sum_d, tile_n), lambda h, n: (h, 0, n)),
                pl.BlockSpec((1, (L + 1) * attn_dim, sum_d),
                             lambda h, n: (h, 0, 0)),
            ],
            out_specs=pl.BlockSpec((1, L, tile_n), lambda h, n: (h, 0, n))),
        compiler_params=cparams,
    )(x_cat, wa)

    # Global normalizer 1/(max-min) over REAL columns only (padding excluded);
    # tiny XLA reduce on the lane-dense scores, fed to pass B via SMEM prefetch.
    # eps guard is noop for real data, avoids inf when all scores are equal.
    s_real = scores[:, :, :N]
    rng = jnp.max(s_real) - jnp.min(s_real)
    inv_scale = (1.0 / jnp.maximum(rng, 1e-30)).reshape((1,)).astype(jnp.float32)

    # ---------------------------------- pass B -------------------------------
    out_t = pl.pallas_call(
        _make_combine_kernel(L, dims),
        out_shape=jax.ShapeDtypeStruct((n_hop, out_dim, N_pad), jnp.float32),
        grid_spec=pltpu.PrefetchScalarGridSpec(
            num_scalar_prefetch=1,
            grid=grid,
            in_specs=[
                pl.BlockSpec((1, L, tile_n), lambda h, n, inv: (h, 0, n)),
                pl.BlockSpec((1, sum_d, tile_n), lambda h, n, inv: (h, 0, n)),
                pl.BlockSpec((1, out_dim, sum_d), lambda h, n, inv: (h, 0, 0)),
            ],
            out_specs=pl.BlockSpec((1, out_dim, tile_n),
                                   lambda h, n, inv: (h, 0, n))),
        compiler_params=cparams,
    )(inv_scale, scores, x_cat, vcat)

    # Back to the torch layout (n_hop, N, out_dim); drop padded columns.
    return jnp.swapaxes(out_t[:, :, :N], 1, 2)


# ----------------------------------------------------------------------------
# Pure-JAX reference (mirror of the torch forward) for verification
# ----------------------------------------------------------------------------
def combine_reference(xs, kproj, qprojs, vprojs):
    ego = jnp.einsum('hnd,hda->hna', xs[0], kproj)[..., None]              # (h,n,a,1)
    attns = jnp.stack([jnp.einsum('hnd,hda->hna', x, q)
                       for x, q in zip(xs, qprojs)], axis=-1)              # (h,n,a,L)
    hiddens = jnp.stack([jnp.einsum('hnd,hdo->hno', x, v)
                         for x, v in zip(xs, vprojs)], axis=-1)            # (h,n,o,L)
    a = jnp.sum(ego * attns, axis=2, keepdims=True)                        # (h,n,1,L)
    a = a / (jnp.max(a) - jnp.min(a))
    a = jax.nn.softmax(a, axis=3)
    return jnp.sum(a * hiddens, axis=3)                                    # (h,n,o)


if __name__ == "__main__":
    n_hop, N = 2, 1024
    input_dim_list = [32, 16, 8]
    attn_dim, output_dim = 16, 32

    key = jax.random.PRNGKey(0)
    keys = iter(jax.random.split(key, 1 + 3 * len(input_dim_list)))

    xs = [jax.random.normal(next(keys), (n_hop, N, d), jnp.float32) * 0.5
          for d in input_dim_list]

    def xavier(k, shape):
        fan_in, fan_out = shape[-2], shape[-1]
        lim = (6.0 / (fan_in + fan_out)) ** 0.5
        return jax.random.uniform(k, shape, jnp.float32, -lim, lim)

    kproj = xavier(next(keys), (n_hop, input_dim_list[0], attn_dim))
    qprojs = [xavier(next(keys), (n_hop, d, attn_dim)) for d in input_dim_list]
    vprojs = [xavier(next(keys), (n_hop, d, output_dim)) for d in input_dim_list]

    out = jax.block_until_ready(combine_forward(xs, kproj, qprojs, vprojs))
    ref = combine_reference(xs, kproj, qprojs, vprojs)

    assert out.shape == (n_hop, N, output_dim), out.shape
    if not bool(jnp.allclose(out, ref, atol=5e-2, rtol=5e-2)):
        err = float(jnp.max(jnp.abs(out - ref)))
        raise AssertionError(f"Pallas kernel mismatch vs JAX reference (max abs err {err})")
    print("KERNEL_OK")
</pallas_src>

<mosaic_0001>
module attributes {stable_mosaic.version = 11 : i64} {
  func.func @kernel(%arg0: i32, %arg1: i32, %arg2: memref<1x56x1024xbf16, #tpu.memory_space<vmem>>, %arg3: memref<1x64x56xbf16, #tpu.memory_space<vmem>>, %arg4: memref<1x3x1024xf32, #tpu.memory_space<vmem>>) attributes {dimension_semantics = [#tpu.dimension_semantics<parallel>, #tpu.dimension_semantics<parallel>], iteration_bounds = array<i64: 2, 1>, scalar_prefetch = 0 : i64, scratch_operands = 0 : i64, tpu.core_type = #tpu.core_type<tc>, window_params = [{transform_indices = @transform_0, window_bounds = array<i64: 1, 56, 1024>}, {transform_indices = @transform_1, window_bounds = array<i64: 1, 64, 56>}, {transform_indices = @transform_2, window_bounds = array<i64: 1, 3, 1024>}]} {
    %c0 = arith.constant 0 : index
    %c0_0 = arith.constant 0 : index
    %c0_1 = arith.constant 0 : index
    %0 = vector.load %arg2[%c0, %c0_0, %c0_1] : memref<1x56x1024xbf16, #tpu.memory_space<vmem>>, vector<1x56x1024xbf16>
    %1 = vector.shape_cast %0 : vector<1x56x1024xbf16> to vector<56x1024xbf16>
    %c0_2 = arith.constant 0 : index
    %c0_3 = arith.constant 0 : index
    %c0_4 = arith.constant 0 : index
    %2 = vector.load %arg3[%c0_2, %c0_3, %c0_4] : memref<1x64x56xbf16, #tpu.memory_space<vmem>>, vector<1x64x56xbf16>
    %3 = vector.shape_cast %2 : vector<1x64x56xbf16> to vector<64x56xbf16>
    %cst = arith.constant dense<0.000000e+00> : vector<64x1024xf32>
    %4 = tpu.matmul %3, %1, %cst {dimension_numbers = #tpu.dot_dimension_numbers<[1], [0], [0], [1], [0, 0, 1, 1], [], []>} : vector<64x56xbf16>, vector<56x1024xbf16>, vector<64x1024xf32> -> vector<64x1024xf32>
    %5 = vector.extract_strided_slice %4 {offsets = [0, 0], sizes = [16, 1024], strides = [1, 1]} : vector<64x1024xf32> to vector<16x1024xf32>
    %6 = vector.extract_strided_slice %4 {offsets = [16, 0], sizes = [16, 1024], strides = [1, 1]} : vector<64x1024xf32> to vector<16x1024xf32>
    %7 = arith.mulf %5, %6 : vector<16x1024xf32>
    %cst_5 = arith.constant dense<0.000000e+00> : vector<1024xf32>
    %8 = vector.multi_reduction <add>, %7, %cst_5 [0] : vector<16x1024xf32> to vector<1024xf32>
    %9 = vector.shape_cast %8 : vector<1024xf32> to vector<1x1024xf32>
    %10 = vector.extract_strided_slice %4 {offsets = [32, 0], sizes = [16, 1024], strides = [1, 1]} : vector<64x1024xf32> to vector<16x1024xf32>
    %11 = arith.mulf %5, %10 : vector<16x1024xf32>
    %cst_6 = arith.constant dense<0.000000e+00> : vector<1024xf32>
    %12 = vector.multi_reduction <add>, %11, %cst_6 [0] : vector<16x1024xf32> to vector<1024xf32>
    %13 = vector.shape_cast %12 : vector<1024xf32> to vector<1x1024xf32>
    %14 = vector.extract_strided_slice %4 {offsets = [48, 0], sizes = [16, 1024], strides = [1, 1]} : vector<64x1024xf32> to vector<16x1024xf32>
    %15 = arith.mulf %5, %14 : vector<16x1024xf32>
    %cst_7 = arith.constant dense<0.000000e+00> : vector<1024xf32>
    %16 = vector.multi_reduction <add>, %15, %cst_7 [0] : vector<16x1024xf32> to vector<1024xf32>
    %17 = vector.shape_cast %16 : vector<1024xf32> to vector<1x1024xf32>
    %18 = tpu.concatenate %9, %13, %17 in 0 : vector<1x1024xf32>, vector<1x1024xf32>, vector<1x1024xf32> -> vector<3x1024xf32>
    %c0_8 = arith.constant 0 : index
    %c0_9 = arith.constant 0 : index
    %c0_10 = arith.constant 0 : index
    %19 = vector.load %arg4[%c0_8, %c0_9, %c0_10] : memref<1x3x1024xf32, #tpu.memory_space<vmem>>, vector<1x3x1024xf32>
    %20 = vector.shape_cast %19 : vector<1x3x1024xf32> to vector<3x1024xf32>
    %21 = vector.shape_cast %18 : vector<3x1024xf32> to vector<1x3x1024xf32>
    tpu.vector_store %arg4[%c0_8, %c0_9, %c0_10], %21 {strides = array<i32>} : memref<1x3x1024xf32, #tpu.memory_space<vmem>>, vector<1x3x1024xf32>,
    return
  }
  func.func @transform_0(%arg0: i32, %arg1: i32) -> (i32, i32, i32) {
    %c0_i32 = arith.constant 0 : i32
    %c0_i32_0 = arith.constant 0 : i32
    return %arg0, %c0_i32, %arg1 : i32, i32, i32
  }
  func.func @transform_1(%arg0: i32, %arg1: i32) -> (i32, i32, i32) {
    %c0_i32 = arith.constant 0 : i32
    %c0_i32_0 = arith.constant 0 : i32
    %c0_i32_1 = arith.constant 0 : i32
    return %arg0, %c0_i32, %c0_i32_0 : i32, i32, i32
  }
  func.func @transform_2(%arg0: i32, %arg1: i32) -> (i32, i32, i32) {
    %c0_i32 = arith.constant 0 : i32
    %c0_i32_0 = arith.constant 0 : i32
    return %arg0, %c0_i32, %arg1 : i32, i32, i32
  }
}

</mosaic_0001>

<bundles_post_ra>
// kernel: tpu_custom_call.1
= control target key start
LH: loop header
LB: loop body
LE: loop exit
PB: predicated region body
PF: predicated region fallthrough
CT: control target
= control target key end

     0   :  { %7 = vsyncpa [#allocation3], 0  ;;  %s1701_s0 = inlined_call_operand.hbm [shape: bf16[2,56,1024], index: 0, kind: input, shape index: {}]   ;;  %s1702_s1 = inlined_call_operand.vmem [shape: bf16[2,64,56], index: 1, kind: input, shape index: {}]   ;;  %s1703_s2 = inlined_call_operand.vmem [shape: f32[2,3,1024], index: 2, kind: output, shape index: {}]  }
   0x1   :  { %9 = vsyncpa [#allocation3 + $0x1], 0  ;;  %s1391_s9 = smov 0   ;;  %s1393_s10 = smov 0  }
   0x2   :  { %s1395_s11 = smov 0   ;;  %s1397_s12 = smov 0  }
   0x3   :  { %s1399_s13 = smov 0   ;;  %s1401_s14 = smov 0  }
   0x4 LB: > { %s1046_s15 = sadd.s32 4294967295, %s1372_s14   ;;  %s27_s16 = sadd.s32 1, %s1368_s13  ;;  %s1372_s14 = sphi %s1401_s14, %s15_s14   ;;  %s1368_s13 = sphi %s1399_s13, %s1709_s13   ;;  %s1364_s12 = sphi %s1397_s12, %s1708_s12   ;;  %s1360_s11 = sphi %s1395_s11, %s1707_s11   ;;  %s1356_s10 = sphi %s1393_s10, %s1706_s10   ;;  %s1352_s9 = sphi %s1391_s9, %s1705_s9  }
   0x5   : > { %p29_p0 = scmp.ge.s32.totalorder %s27_s16, 2  ;;  %s36_s17 = sadd.s32 1, %s1360_s11 }
   0x6   : > { %p43_p1 = scmp.ne.s32.totalorder %s1360_s11, %s1356_s10  ;;  %p44_p2 = scmp.eq.s32.totalorder %s1372_s14, 0 }
   0x7   : > { %s1711_s16 = smov (%p29_p0, %s27_s16), 0  ;;  %p49_p4 = scmp.ne.s32.totalorder %s1356_s10, %s1352_s9 }
   0x8   : > { %p45_p3 = por %p44_p2, %p43_p1  ;;  %s31_s18 = ssub.s32 %s1368_s13, %s1711_s16 }
   0x9   : > { %p50_p5 = scmp.eq.s32.totalorder %s1046_s15, 0  ;;  %p34_p6 = scmp.eq.s32.totalorder %s31_s18, 0 }
   0xa   : > { %p1241_p8 = scmp.lt.s32.totalorder %s1372_s14, 2  ;;  %s127_s21 = sand.u32 1, %s1360_s11  }
   0xb   : > { %p1430_p7 = por %p50_p5, %p49_p4  ;;  %s1233_s22 = smul.u32 224, %s1368_s13 }
   0xc   : > { %s1436_s20 = scalar_select %p34_p6, %s1360_s11, %s36_s17  }
   0xd   : > { %s1232_s23 = smul.u32 224, %s127_s21  ;;  %s138_s26 = scalar_lea.hbm %s1701_s0, %s1233_s22 }
   0xe   : > { %p1238_p9 = pnand %p1241_p8, %p45_p3  ;;  %s139_s27 = sshll.u32 %s138_s26, 4  ;;  %s140_s27 = int_to_ptr.hbm [resolvable:$true] %s139_s27 }
   0xf   : > { %s131_s28 = scalar_lea.vmem [#allocation2], %s1232_s23  ;;  %s128_s30 = scalar_lea.sflag [#allocation3], %s127_s21 }
  0x10   : > { %s141_s29 = sshll.u32 %s131_s28, 4  ;;  %s1374_s3 = smov 512   ;;  %s142_s29 = int_to_ptr.vmem [resolvable:$true] %s141_s29 }
  0x11   : > { %s1375_s4 = smov 32   ;;  %p1051_p10 = scmp.ge.s32.totalorder %s1372_s14, 1 }
  0x12   : > { %1240 = dma.hbm_to_vmem [thread:$0]  (!%p1238_p9), %s140_s27, 3584, %s142_s29, %s128_s30, %s1374_s3, %s1374_s3, %s1375_s4  }
  0x13   : > { %p157_p11 = scmp.lt.s32.totalorder %s1372_s14, 3 }
  0x15   : > { %p158_p12 = pnand %p1051_p10, %p157_p11 }
  0x16   : > { %s163_s5 = sand.u32 (!%p158_p12), 1, %s1356_s10  }
  0x17   : > { %161 = sbr.rel (%p158_p12) target bundleno = 324 (0x144), region = 28  ;;  %s164_s7 = scalar_lea.sflag (!%p158_p12), [#allocation3], %s163_s5 }
  0x18   : > { %s1234_s6 = smul.u32 (!%p158_p12), 224, %s163_s5 }
  0x1a   : > { %s1446_s8 = scalar_lea.vmem (!%p158_p12), [#allocation2], %s1234_s6 }
  0x1c   : > { %1347 = dma.done.wait (%p1430_p7), %s164_s7, 3584  }
  0x1d   : > { %1349 = vsyncadd (%p1430_p7), %s164_s7, 4294963712  ;;  %v239_v0 = vld [vmem:[%s1446_s8 + $0xc0] sm:$0xff]  ;;  %v240_v1 = vld [vmem:[%s1446_s8 + $0xc8] sm:$0xff]  ;;  %vm424_vm0 = vcmask 1043456   ;;  %p199_p13 = scmp.lt.s32.totalorder %s1364_s12, 1  ;;  %vm411_vm1 = vcmask 457728  }
  0x1e   : > { %v347_v2 = vunpack.c.l.b16 %v239_v0  ;;  %v348_v3 = vunpack.c.h.b16 %v239_v0  ;;  %v349_v4 = vunpack.c.l.b16 %v240_v1  ;;  %v350_v5 = vunpack.c.h.b16 %v240_v1  ;;  %v1138_v6 = vld [vmem:[%s1446_s8 + $0x80] sm:$0xf]  ;;  %v1220_v12 = vld [vmem:[%s1446_s8 + $0x84] sm:$0xf]  ;;  %v1146_v14 = vld [vmem:[%s1446_s8 + $0x88] sm:$0xf] }
  0x1f   : > { %v1224_v7 = vld [vmem:[%s1446_s8 + $0x9c] sm:$0xf0]  ;;  %v1140_v13 = vld [vmem:[%s1446_s8 + $0xa0] sm:$0xf0]  ;;  %v1225_v15 = vld [vmem:[%s1446_s8 + $0xa4] sm:$0xf0] }
  0x20   : > { %v379_v8 = vpack.c.b16 %v347_v2, %v347_v2  ;;  %v380_v9 = vpack.c.b16 %v348_v3, %v348_v3  ;;  %v381_v10 = vpack.c.b16 %v349_v4, %v349_v4  ;;  %v382_v11 = vpack.c.b16 %v350_v5, %v350_v5  ;;  %v1221_v16 = vld [vmem:[%s1446_s8 + $0x8c] sm:$0xf]  ;;  %v1106_v24 = vld [vmem:[%s1446_s8 + $0x40] sm:$0xf]  ;;  %s1713_s12 = smov (!%p199_p13, %s1364_s12), 1  ;;  %v242_v34 = vld [vmem:[%s1446_s8 + $0xd8] sm:$0xff] }
  0x21   : > { %v1148_v17 = vld [vmem:[%s1446_s8 + $0xa8] sm:$0xf0]  ;;  %v1139_v22 = vor.u32 %v1224_v7, %v1138_v6  ;;  %v1143_v23 = vor.u32 %v1220_v12, %v1140_v13  ;;  %v1216_v25 = vld [vmem:[%s1446_s8 + $0x5c] sm:$0xf0]  ;;  %v1147_v26 = vor.u32 %v1225_v15, %v1146_v14  ;;  %v1212_v28 = vld [vmem:[%s1446_s8 + $0x44] sm:$0xf]  ;;  %v354_v39 = vunpack.c.h.b16 %v242_v34 }
  0x22   : > { %v426_v18 = vsel %vm424_vm0, %v379_v8, 0  ;;  %v429_v19 = vsel %vm424_vm0, %v380_v9, 0  ;;  %v432_v20 = vsel %vm424_vm0, %v381_v10, 0  ;;  %v435_v21 = vsel %vm424_vm0, %v382_v11, 0  ;;  %v1108_v29 = vld [vmem:[%s1446_s8 + $0x60] sm:$0xf0] }
  0x23   : > { %453 = vmatpush.bf16.msra.mxu0 %v426_v18  ;;  %482 = vmatpush.bf16.msra.mxu1 %v429_v19  ;;  %v1151_v27 = vor.u32 %v1221_v16, %v1148_v17  ;;  %v1114_v30 = vld [vmem:[%s1446_s8 + $0x48] sm:$0xf]  ;;  %v1213_v32 = vld [vmem:[%s1446_s8 + $0x4c] sm:$0xf]  ;;  %v1107_v35 = vor.u32 %v1216_v25, %v1106_v24  ;;  %v1111_v36 = vor.u32 %v1212_v28, %v1108_v29  ;;  %v1074_v37 = vld [vmem:[%s1446_s8] sm:$0xf]  ;;  %v353_v40 = vunpack.c.l.b16 %v242_v34 }
  0x24   : > { %511 = vmatpush.bf16.msra.mxu2 %v432_v20  ;;  %540 = vmatpush.bf16.msra.mxu3 %v435_v21  ;;  %v1217_v31 = vld [vmem:[%s1446_s8 + $0x64] sm:$0xf0]  ;;  %v1116_v33 = vld [vmem:[%s1446_s8 + $0x68] sm:$0xf0]  ;;  %v1208_v38 = vld [vmem:[%s1446_s8 + $0x1c] sm:$0xf0]  ;;  %v386_v52 = vpack.c.b16 %v354_v39, %v354_v39 }
  0x25   : > { %s1202_s9 = sshll.u32 %s1713_s12, 5  ;;  %v241_v41 = vld [vmem:[%s1446_s8 + $0xd0] sm:$0xff]  ;;  %v1115_v42 = vor.u32 %v1217_v31, %v1114_v30  ;;  %v1119_v43 = vor.u32 %v1213_v32, %v1116_v33  ;;  %v1204_v44 = vld [vmem:[%s1446_s8 + $0x4] sm:$0xf]  ;;  %v1082_v46 = vld [vmem:[%s1446_s8 + $0x8] sm:$0xf]  ;;  %v385_v53 = vpack.c.b16 %v353_v40, %v353_v40  ;;  %v1075_v54 = vor.u32 %v1208_v38, %v1074_v37 }
  0x26   : > { %v1076_v45 = vld [vmem:[%s1446_s8 + $0x20] sm:$0xf0]  ;;  %v1209_v47 = vld [vmem:[%s1446_s8 + $0x24] sm:$0xf0]  ;;  %v1205_v48 = vld [vmem:[%s1446_s8 + $0xc] sm:$0xf]  ;;  %v352_v50 = vunpack.c.h.b16 %v241_v41  ;;  %v351_v51 = vunpack.c.l.b16 %v241_v41  ;;  %s1496_s18 = scalar_lea.vmem %s1702_s1, %s1202_s9  ;;  %s1632_s22 = scalar_lea.vmem %s1703_s2, %s1202_s9 }
  0x27   : > { %454 = vmatpush.bf16.msra.mxu0 %v1139_v22  ;;  %483 = vmatpush.bf16.msra.mxu1 %v1143_v23  ;;  %v1084_v49 = vld [vmem:[%s1446_s8 + $0x28] sm:$0xf0]  ;;  %v1079_v55 = vor.u32 %v1204_v44, %v1076_v45  ;;  %v1083_v56 = vor.u32 %v1209_v47, %v1082_v46  ;;  %v1499_v58 = vld [vmem:[%s1496_s18] sm:$0xff]  ;;  %v1223_v61 = vld [vmem:[%s1446_s8 + $0x9c] sm:$0xf]  ;;  %v447_v63 = vsel %vm424_vm0, %v386_v52, 0 }
  0x28   : > { %512 = vmatpush.bf16.msra.mxu2 %v1147_v26  ;;  %541 = vmatpush.bf16.msra.mxu3 %v1151_v27  ;;  %v1087_v57 = vor.u32 %v1205_v48, %v1084_v49  ;;  %v384_v59 = vpack.c.b16 %v352_v50, %v352_v50  ;;  %v383_v60 = vpack.c.b16 %v351_v51, %v351_v51  ;;  %v1164_v62 = vld [vmem:[%s1446_s8 + $0xb8] sm:$0xf0]  ;;  %v444_v0 = vsel %vm424_vm0, %v385_v53, 0  ;;  %v1162_v1 = vld [vmem:[%s1446_s8 + $0x98] sm:$0xf]  ;;  %v1229_v25 = vld [vmem:[%s1496_s18 + $0x8] sm:$0xff] }
  0x29   : > { %v1227_v2 = vld [vmem:[%s1446_s8 + $0xb4] sm:$0xf0]  ;;  %v1222_v3 = vld [vmem:[%s1446_s8 + $0x94] sm:$0xf]  ;;  %v1167_v7 = vor.u32 %v1223_v61, %v1164_v62  ;;  %v1154_v9 = vld [vmem:[%s1446_s8 + $0x90] sm:$0xf] }
  0x2a   : > { %v1156_v4 = vld [vmem:[%s1446_s8 + $0xb0] sm:$0xf0]  ;;  %v441_v5 = vsel %vm424_vm0, %v384_v59, 0  ;;  %v438_v6 = vsel %vm424_vm0, %v383_v60, 0  ;;  %v1163_v8 = vor.u32 %v1227_v2, %v1162_v1  ;;  %v1226_v10 = vld [vmem:[%s1446_s8 + $0xac] sm:$0xf0] }
  0x2b   : > { %455 = vmatpush.bf16.msra.mxu0 %v1107_v35  ;;  %484 = vmatpush.bf16.msra.mxu1 %v1111_v36  ;;  %v1215_v11 = vld [vmem:[%s1446_s8 + $0x5c] sm:$0xf]  ;;  %v1130_v13 = vld [vmem:[%s1446_s8 + $0x58] sm:$0xf]  ;;  %v1159_v14 = vor.u32 %v1222_v3, %v1156_v4  ;;  %v1155_v15 = vor.u32 %v1226_v10, %v1154_v9  ;;  %v1214_v17 = vld [vmem:[%s1446_s8 + $0x54] sm:$0xf] }
  0x2c   : > { %513 = vmatpush.bf16.msra.mxu2 %v1115_v42  ;;  %542 = vmatpush.bf16.msra.mxu3 %v1119_v43  ;;  %v1132_v12 = vld [vmem:[%s1446_s8 + $0x78] sm:$0xf0]  ;;  %v1219_v16 = vld [vmem:[%s1446_s8 + $0x74] sm:$0xf0]  ;;  %v1124_v20 = vld [vmem:[%s1446_s8 + $0x70] sm:$0xf0] }
  0x2d   : > { %v1135_v18 = vor.u32 %v1215_v11, %v1132_v12  ;;  %v1131_v19 = vor.u32 %v1219_v16, %v1130_v13  ;;  %v1122_v21 = vld [vmem:[%s1446_s8 + $0x50] sm:$0xf]  ;;  %v1127_v23 = vor.u32 %v1214_v17, %v1124_v20  ;;  %v1207_v26 = vld [vmem:[%s1446_s8 + $0x1c] sm:$0xf]  ;;  %v1098_v28 = vld [vmem:[%s1446_s8 + $0x18] sm:$0xf] }
  0x2e   : > { %v1218_v22 = vld [vmem:[%s1446_s8 + $0x6c] sm:$0xf0]  ;;  %v1100_v27 = vld [vmem:[%s1446_s8 + $0x38] sm:$0xf0]  ;;  %v1211_v30 = vld [vmem:[%s1446_s8 + $0x34] sm:$0xf0] }
  0x2f   : > { %456 = vmatpush.bf16.msra.mxu0 %v1075_v54  ;;  %485 = vmatpush.bf16.msra.mxu1 %v1079_v55  ;;  %v1123_v24 = vor.u32 %v1218_v22, %v1122_v21  ;;  %v1103_v29 = vor.u32 %v1207_v26, %v1100_v27  ;;  %v1206_v31 = vld [vmem:[%s1446_s8 + $0x14] sm:$0xf]  ;;  %v1099_v33 = vor.u32 %v1211_v30, %v1098_v28  ;;  %v1090_v35 = vld [vmem:[%s1446_s8 + $0x10] sm:$0xf]  ;;  %v1231_v39 = vld [vmem:[%s1496_s18 + $0x18] sm:$0xff]  ;;  %vm897_vm2 = vcmask 1040384  }
  0x30   : > { %514 = vmatpush.bf16.msra.mxu2 %v1083_v56  ;;  %543 = vmatpush.bf16.msra.mxu3 %v1087_v57  ;;  %v1092_v32 = vld [vmem:[%s1446_s8 + $0x30] sm:$0xf0]  ;;  %v1210_v36 = vld [vmem:[%s1446_s8 + $0x2c] sm:$0xf0]  ;;  %vm906_vm3 = vcmask 1041408  }
  0x31   : > { %v1095_v34 = vor.u32 %v1206_v31, %v1092_v32  ;;  %v1091_v37 = vor.u32 %v1210_v36, %v1090_v35  ;;  %v1230_v38 = vld [vmem:[%s1496_s18 + $0x10] sm:$0xff] }
  0x32   : > { %1168 = vmatmul.msk.bf16.vlgmr.msra.gmra.mxu0 %vm411_vm1, %v1499_v58  ;;  %1172 = vmatmul.msk.bf16.vlgmr.msra.gmra.mxu1 %vm411_vm1, %v1499_v58 }
  0x33   : > { %1176 = vmatmul.msk.bf16.vlgmr.msra.gmra.mxu2 %vm411_vm1, %v1499_v58  ;;  %1180 = vmatmul.msk.bf16.vlgmr.msra.gmra.mxu3 %vm411_vm1, %v1499_v58 }
  0x34   : > { %656 = vmatpush.bf16.msrb.mxu3 %v447_v63  ;;  %627 = vmatpush.bf16.msrb.mxu2 %v444_v0 }
  0x35   : > { %598 = vmatpush.bf16.msrb.mxu1 %v441_v5  ;;  %569 = vmatpush.bf16.msrb.mxu0 %v438_v6 }
  0x38   : > { %657 = vmatpush.bf16.msrb.mxu3 %v1167_v7  ;;  %628 = vmatpush.bf16.msrb.mxu2 %v1163_v8 }
  0x39   : > { %599 = vmatpush.bf16.msrb.mxu1 %v1159_v14  ;;  %570 = vmatpush.bf16.msrb.mxu0 %v1155_v15 }
  0x3c   : > { %658 = vmatpush.bf16.msrb.mxu3 %v1135_v18  ;;  %629 = vmatpush.bf16.msrb.mxu2 %v1131_v19 }
  0x3d   : > { %600 = vmatpush.bf16.msrb.mxu1 %v1127_v23  ;;  %571 = vmatpush.bf16.msrb.mxu0 %v1123_v24 }
  0x40   : > { %659 = vmatpush.bf16.msrb.mxu3 %v1103_v29  ;;  %630 = vmatpush.bf16.msrb.mxu2 %v1099_v33 }
  0x41   : > { %601 = vmatpush.bf16.msrb.mxu1 %v1095_v34  ;;  %572 = vmatpush.bf16.msrb.mxu0 %v1091_v37 }
  0x42   : > { %1169 = vmatmul.msk.bf16.gmra.mxu0 %vm411_vm1, %v1229_v25  ;;  %1173 = vmatmul.msk.bf16.gmra.mxu1 %vm411_vm1, %v1229_v25 }
  0x43   : > { %1177 = vmatmul.msk.bf16.gmra.mxu2 %vm411_vm1, %v1229_v25  ;;  %1181 = vmatmul.msk.bf16.gmra.mxu3 %vm411_vm1, %v1229_v25 }
  0x52   : > { %1170 = vmatmul.msk.bf16.gmra.mxu0 %vm411_vm1, %v1230_v38  ;;  %1174 = vmatmul.msk.bf16.gmra.mxu1 %vm411_vm1, %v1230_v38 }
  0x53   : > { %1178 = vmatmul.msk.bf16.gmra.mxu2 %vm411_vm1, %v1230_v38  ;;  %1182 = vmatmul.msk.bf16.gmra.mxu3 %vm411_vm1, %v1230_v38 }
  0x62   : > { %1171 = vmatmul.msk.bf16.gmra.mxu0 %vm411_vm1, %v1231_v39  ;;  %1175 = vmatmul.msk.bf16.gmra.mxu1 %vm411_vm1, %v1231_v39 }
  0x63   : > { %1179 = vmatmul.msk.bf16.gmra.mxu2 %vm411_vm1, %v1231_v39  ;;  %1183 = vmatmul.msk.bf16.gmra.mxu3 %vm411_vm1, %v1231_v39 }
  0x72   : > { %1184 = vmatmul.msk.bf16.vlgmr.msrb.gmra.mxu0 %vm411_vm1, %v1499_v58  ;;  %1188 = vmatmul.msk.bf16.vlgmr.msrb.gmra.mxu1 %vm411_vm1, %v1499_v58 }
  0x73   : > { %1192 = vmatmul.msk.bf16.vlgmr.msrb.gmra.mxu2 %vm411_vm1, %v1499_v58  ;;  %1196 = vmatmul.msk.bf16.vlgmr.msrb.gmra.mxu3 %vm411_vm1, %v1499_v58 }
  0x82   : > { %1185 = vmatmul.msk.bf16.gmra.mxu0 %vm411_vm1, %v1229_v25  ;;  %1189 = vmatmul.msk.bf16.gmra.mxu1 %vm411_vm1, %v1229_v25 }
  0x83   : > { %1193 = vmatmul.msk.bf16.gmra.mxu2 %vm411_vm1, %v1229_v25  ;;  %1197 = vmatmul.msk.bf16.gmra.mxu3 %vm411_vm1, %v1229_v25 }
  0x92   : > { %1186 = vmatmul.msk.bf16.gmra.mxu0 %vm411_vm1, %v1230_v38  ;;  %1190 = vmatmul.msk.bf16.gmra.mxu1 %vm411_vm1, %v1230_v38 }
  0x93   : > { %1194 = vmatmul.msk.bf16.gmra.mxu2 %vm411_vm1, %v1230_v38  ;;  %1198 = vmatmul.msk.bf16.gmra.mxu3 %vm411_vm1, %v1230_v38 }
  0xa2   : > { %1187 = vmatmul.msk.bf16.gmra.mxu0 %vm411_vm1, %v1231_v39  ;;  %1191 = vmatmul.msk.bf16.gmra.mxu1 %vm411_vm1, %v1231_v39 }
  0xa3   : > { %1195 = vmatmul.msk.bf16.gmra.mxu2 %vm411_vm1, %v1231_v39  ;;  %1199 = vmatmul.msk.bf16.gmra.mxu3 %vm411_vm1, %v1231_v39 }
  0xaf   : > { %v1572_v40 = vpop.f32.mrf.mxu0  ;;  %v1574_v41 = vpop.f32.mrf.mxu1 }
  0xb6   : > { %v1576_v42 = vpop.f32.mrf.mxu2  ;;  %v1578_v43 = vpop.f32.mrf.mxu3 }
  0xb7   : > { %v1580_v44 = vpop.f32.mrf.mxu0  ;;  %v1582_v45 = vpop.f32.mrf.mxu1 }
  0xbe   : > { %v1584_v46 = vpop.f32.mrf.mxu2  ;;  %v1586_v47 = vpop.f32.mrf.mxu3 }
  0xbf   : > { %v463_v48 = vpop.f32.mrf.mxu0  ;;  %v492_v49 = vpop.f32.mrf.mxu1 }
  0xc0   : > { %v682_v61 = vmul.f32 %v492_v49, %v1574_v41  ;;  %v681_v6 = vmul.f32 %v463_v48, %v1572_v40 }
  0xc6   : > { %v521_v50 = vpop.f32.mrf.mxu2  ;;  %v550_v51 = vpop.f32.mrf.mxu3 }
  0xc7   : > { %v465_v52 = vpop.f32.mrf.mxu0  ;;  %v494_v53 = vpop.f32.mrf.mxu1  ;;  %v684_v18 = vmul.f32 %v550_v51, %v1578_v43  ;;  %v683_v28 = vmul.f32 %v521_v50, %v1576_v42 }
  0xc8   : > { %v690_v58 = vmul.f32 %v494_v53, %v1582_v45  ;;  %v689_v2 = vmul.f32 %v465_v52, %v1580_v44 }
  0xca   : > { %v704_v3 = vadd.f32 %v690_v58, %v682_v61  ;;  %v697_v8 = vadd.f32 %v689_v2, %v681_v6 }
  0xcc   : > { %v705_v9 = vrot.slane %v704_v3, 4  ;;  %v698_v21 = vrot.slane %v697_v8, 4 }
  0xce   : > { %v523_v54 = vpop.f32.mrf.mxu2  ;;  %v552_v55 = vpop.f32.mrf.mxu3  ;;  %v706_v22 = vadd.f32 %v705_v9, %v704_v3  ;;  %v699_v31 = vadd.f32 %v698_v21, %v697_v8 }
  0xcf   : > { %v468_v56 = vpop.f32.mrf.mxu0  ;;  %v497_v57 = vpop.f32.mrf.mxu1  ;;  %v692_v14 = vmul.f32 %v552_v55, %v1586_v47  ;;  %v691_v23 = vmul.f32 %v523_v54, %v1584_v46 }
  0xd0   : > { %v754_v0 = vmul.f32 %v497_v57, %v1574_v41  ;;  %v753_v7 = vmul.f32 %v468_v56, %v1572_v40  ;;  %v707_v32 = vrot.slane %v706_v22, 2  ;;  %v700_v55 = vrot.slane %v699_v31, 2 }
  0xd1   : > { %v718_v29 = vadd.f32 %v692_v14, %v684_v18  ;;  %v711_v33 = vadd.f32 %v691_v23, %v683_v28 }
  0xd2   : > { %v708_v56 = vadd.f32 %v707_v32, %v706_v22  ;;  %v701_v2 = vadd.f32 %v700_v55, %v699_v31 }
  0xd3   : > { %v719_v39 = vrot.slane %v718_v29, 4  ;;  %v712_v57 = vrot.slane %v711_v33, 4 }
  0xd4   : > { %v709_v3 = vrot.slane %v708_v56, 1 }
  0xd6   : > { %v526_v59 = vpop.f32.mrf.mxu2  ;;  %v555_v60 = vpop.f32.mrf.mxu3 }
  0xd7   : > { %v470_v62 = vpop.f32.mrf.mxu0  ;;  %v499_v63 = vpop.f32.mrf.mxu1  ;;  %v756_v19 = vmul.f32 %v555_v60, %v1578_v43  ;;  %v755_v25 = vmul.f32 %v526_v59, %v1576_v42 }
  0xd8   : > { %v762_v1 = vmul.f32 %v499_v63, %v1582_v45  ;;  %v761_v4 = vmul.f32 %v470_v62, %v1580_v44  ;;  %v720_v63 = vadd.f32 %v719_v39, %v718_v29 }
  0xda   : > { %v776_v5 = vadd.f32 %v762_v1, %v754_v0  ;;  %v769_v10 = vadd.f32 %v761_v4, %v753_v7 }
  0xdc   : > { %v777_v11 = vrot.slane %v776_v5, 4  ;;  %v770_v24 = vrot.slane %v769_v10, 4 }
  0xde   : > { %v528_v12 = vpop.f32.mrf.mxu2  ;;  %v557_v13 = vpop.f32.mrf.mxu3  ;;  %v778_v26 = vadd.f32 %v777_v11, %v776_v5  ;;  %v771_v34 = vadd.f32 %v770_v24, %v769_v10 }
  0xdf   : > { %v764_v15 = vmul.f32 %v557_v13, %v1586_v47  ;;  %v473_v16 = vpop.f32.mrf.mxu0  ;;  %v502_v17 = vpop.f32.mrf.mxu1  ;;  %v763_v20 = vmul.f32 %v528_v12, %v1584_v46 }
  0xe0   : > { %v779_v35 = vrot.slane %v778_v26, 2  ;;  %v825_v48 = vmul.f32 %v473_v16, %v1572_v40  ;;  %v826_v53 = vmul.f32 %v502_v17, %v1574_v41  ;;  %v772_v58 = vrot.slane %v771_v34, 2 }
  0xe1   : > { %v790_v27 = vadd.f32 %v764_v15, %v756_v19  ;;  %v783_v30 = vadd.f32 %v763_v20, %v755_v25  ;;  %v713_v41 = vadd.f32 %v712_v57, %v711_v33  ;;  %v721_v15 = vrot.slane %v720_v63, 2 }
  0xe2   : > { %v780_v59 = vadd.f32 %v779_v35, %v778_v26  ;;  %v773_v4 = vadd.f32 %v772_v58, %v771_v34  ;;  %v702_v19 = vrot.slane %v701_v2, 1  ;;  %v710_v25 = vadd.f32 %v709_v3, %v708_v56 }
  0xe3   : > { %v791_v36 = vrot.slane %v790_v27, 4  ;;  %v784_v52 = vrot.slane %v783_v30, 4  ;;  %v714_v23 = vrot.slane %v713_v41, 2 }
  0xe4   : > { %v774_v20 = vrot.slane %v773_v4, 1 }
  0xe5   : > { %v792_v60 = vadd.f32 %v791_v36, %v790_v27  ;;  %v785_v40 = vadd.f32 %v784_v52, %v783_v30  ;;  %v722_v27 = vadd.f32 %v721_v15, %v720_v63  ;;  %v715_v34 = vadd.f32 %v714_v23, %v713_v41 }
  0xe6   : > { %v531_v37 = vpop.f32.mrf.mxu2  ;;  %v560_v38 = vpop.f32.mrf.mxu3  ;;  %v775_v31 = vadd.f32 %v774_v20, %v773_v4 }
  0xe7   : > { %v475_v49 = vpop.f32.mrf.mxu0  ;;  %v504_v51 = vpop.f32.mrf.mxu1  ;;  %v793_v5 = vrot.slane %v792_v60, 2  ;;  %v827_v9 = vmul.f32 %v531_v37, %v1576_v42  ;;  %v828_v10 = vmul.f32 %v560_v38, %v1578_v43  ;;  %v786_v16 = vrot.slane %v785_v40, 2 }
  0xe8   : > { %v833_v50 = vmul.f32 %v475_v49, %v1580_v44  ;;  %v834_v54 = vmul.f32 %v504_v51, %v1582_v45  ;;  %v781_v44 = vrot.slane %v780_v59, 1 }
  0xe9   : > { %v794_v42 = vadd.f32 %v793_v5, %v792_v60  ;;  %v787_v28 = vadd.f32 %v786_v16, %v785_v40 }
  0xea   : > { %v841_v61 = vadd.f32 %v833_v50, %v825_v48  ;;  %v848_v62 = vadd.f32 %v834_v54, %v826_v53  ;;  %v703_v48 = vadd.f32 %v702_v19, %v701_v2  ;;  %v723_v54 = vrot.slane %v722_v27, 1 }
  0xeb   : > { %v795_v35 = vrot.slane %v794_v42, 1  ;;  %v788_v55 = vrot.slane %v787_v28, 1 }
  0xec   : > { %v842_v0 = vrot.slane %v841_v61, 4  ;;  %v849_v1 = vrot.slane %v848_v62, 4  ;;  %v898_v57 = vsel %vm897_vm2, %v703_v48, %v775_v31  ;;  %v724_v2 = vadd.f32 %v723_v54, %v722_v27 }
  0xed   : > { %v789_v3 = vadd.f32 %v788_v55, %v787_v28 }
  0xee   : > { %v843_v45 = vadd.f32 %v842_v0, %v841_v61  ;;  %v850_v6 = vadd.f32 %v849_v1, %v848_v62  ;;  %v533_v7 = vpop.f32.mrf.mxu2  ;;  %v562_v8 = vpop.f32.mrf.mxu3  ;;  %v716_v61 = vrot.slane %v715_v34, 1  ;;  %v796_v62 = vadd.f32 %v795_v35, %v794_v42 }
  0xef   : > { %v835_v11 = vmul.f32 %v533_v7, %v1584_v46  ;;  %v836_v12 = vmul.f32 %v562_v8, %v1586_v47  ;;  %v1612_v13 = vpop.f32.mrf.mxu0  ;;  %v1614_v14 = vpop.f32.mrf.mxu1  ;;  %v782_v46 = vadd.f32 %v781_v44, %v780_v59 }
  0xf0   : > { %v844_v17 = vrot.slane %v843_v45, 2  ;;  %v851_v18 = vrot.slane %v850_v6, 2  ;;  %v717_v44 = vadd.f32 %v716_v61, %v715_v34  ;;  %v901_v5 = vsel %vm897_vm2, %v724_v2, %v796_v62 }
  0xf1   : > { %v855_v21 = vadd.f32 %v835_v11, %v827_v9  ;;  %v862_v22 = vadd.f32 %v836_v12, %v828_v10  ;;  %v899_v49 = vsel %vm897_vm2, %v710_v25, %v782_v46 }
  0xf2   : > { %v845_v24 = vadd.f32 %v844_v17, %v843_v45  ;;  %v852_v43 = vadd.f32 %v851_v18, %v850_v6  ;;  %v900_v10 = vsel %vm897_vm2, %v717_v44, %v789_v3 }
  0xf3   : > { %v856_v26 = vrot.slane %v855_v21, 4  ;;  %v863_v47 = vrot.slane %v862_v22, 4 }
  0xf4   : > { %v846_v29 = vrot.slane %v845_v24, 1  ;;  %v853_v30 = vrot.slane %v852_v43, 1 }
  0xf5   : > { %v857_v32 = vadd.f32 %v856_v26, %v855_v21  ;;  %v864_v33 = vadd.f32 %v863_v47, %v862_v22 }
  0xf6   : > { %v847_v36 = vadd.f32 %v846_v29, %v845_v24  ;;  %v854_v37 = vadd.f32 %v853_v30, %v852_v43  ;;  %v1616_v38 = vpop.f32.mrf.mxu2  ;;  %v1618_v39 = vpop.f32.mrf.mxu3 }
  0xf7   : > { %v858_v51 = vrot.slane %v857_v32, 2  ;;  %v865_v52 = vrot.slane %v864_v33, 2  ;;  %v1621_v53 = vpop.f32.mrf.mxu0  ;;  %v1623_v50 = vpop.f32.mrf.mxu1 }
  0xf8   : > { %v908_v56 = vsel %vm906_vm3, %v899_v49, %v854_v37  ;;  %v907_v63 = vsel %vm906_vm3, %v898_v57, %v847_v36 }
  0xf9   : > { %v923_v58 = vrot.slane %v908_v56, 4  ;;  %v859_v59 = vadd.f32 %v858_v51, %v857_v32  ;;  %v866_v60 = vadd.f32 %v865_v52, %v864_v33 }
  0xfb   : > { %v927_v40 = vsel %vm424_vm0, %v907_v63, %v923_v58  ;;  %v860_v0 = vrot.slane %v859_v59, 1  ;;  %v867_v1 = vrot.slane %v866_v60, 1 }
  0xfc   : > { %935 = vst [vmem:[%s1632_s22] sm:$0x77] %v927_v40 }
  0xfd   : > { %v861_v41 = vadd.f32 %v860_v0, %v859_v59  ;;  %v868_v4 = vadd.f32 %v867_v1, %v866_v60 }
  0xfe   : > { %v1638_v45 = vpop.f32.mrf.mxu2  ;;  %v1640_v6 = vpop.f32.mrf.mxu3 }
  0xff   : > { %v910_v7 = vsel %vm906_vm3, %v901_v5, %v868_v4  ;;  %v579_v8 = vpop.f32.mrf.mxu0  ;;  %v608_v9 = vpop.f32.mrf.mxu1  ;;  %v909_v12 = vsel %vm906_vm3, %v900_v10, %v861_v41 }
 0x100   : > { %v924_v11 = vrot.slane %v910_v7, 4  ;;  %v685_v30 = vmul.f32 %v579_v8, %v1612_v13  ;;  %v686_v31 = vmul.f32 %v608_v9, %v1614_v14 }
 0x102   : > { %v928_v15 = vsel %vm424_vm0, %v909_v12, %v924_v11 }
 0x103   : > { %936 = vst [vmem:[%s1632_s22 + $0x8] sm:$0x77] %v928_v15 }
 0x106   : > { %v637_v16 = vpop.f32.mrf.mxu2  ;;  %v666_v17 = vpop.f32.mrf.mxu3 }
 0x107   : > { %v581_v18 = vpop.f32.mrf.mxu0  ;;  %v610_v19 = vpop.f32.mrf.mxu1  ;;  %v688_v55 = vmul.f32 %v666_v17, %v1618_v39  ;;  %v687_v0 = vmul.f32 %v637_v16, %v1616_v38 }
 0x108   : > { %v693_v47 = vmul.f32 %v581_v18, %v1621_v53  ;;  %v694_v27 = vmul.f32 %v610_v19, %v1623_v50 }
 0x10a   : > { %v725_v33 = vadd.f32 %v693_v47, %v685_v30  ;;  %v732_v34 = vadd.f32 %v694_v27, %v686_v31 }
 0x10c   : > { %v726_v58 = vrot.slane %v725_v33, 4  ;;  %v733_v59 = vrot.slane %v732_v34, 4 }
 0x10e   : > { %v639_v20 = vpop.f32.mrf.mxu2  ;;  %v668_v21 = vpop.f32.mrf.mxu3  ;;  %v727_v3 = vadd.f32 %v726_v58, %v725_v33  ;;  %v734_v41 = vadd.f32 %v733_v59, %v732_v34 }
 0x10f   : > { %v584_v22 = vpop.f32.mrf.mxu0  ;;  %v613_v23 = vpop.f32.mrf.mxu1  ;;  %v696_v49 = vmul.f32 %v668_v21, %v1640_v6  ;;  %v695_v60 = vmul.f32 %v639_v20, %v1638_v45 }
 0x110   : > { %v758_v46 = vmul.f32 %v613_v23, %v1614_v14  ;;  %v757_v32 = vmul.f32 %v584_v22, %v1612_v13  ;;  %v728_v20 = vrot.slane %v727_v3, 2  ;;  %v735_v21 = vrot.slane %v734_v41, 2 }
 0x111   : > { %v746_v1 = vadd.f32 %v696_v49, %v688_v55  ;;  %v739_v4 = vadd.f32 %v695_v60, %v687_v0 }
 0x112   : > { %v729_v27 = vadd.f32 %v728_v20, %v727_v3 }
 0x113   : > { %v747_v10 = vrot.slane %v746_v1, 4  ;;  %v740_v22 = vrot.slane %v739_v4, 4 }
 0x116   : > { %v642_v42 = vpop.f32.mrf.mxu2  ;;  %v671_v24 = vpop.f32.mrf.mxu3 }
 0x117   : > { %v586_v43 = vpop.f32.mrf.mxu0  ;;  %v615_v25 = vpop.f32.mrf.mxu1  ;;  %v760_v56 = vmul.f32 %v671_v24, %v1618_v39  ;;  %v759_v62 = vmul.f32 %v642_v42, %v1616_v38 }
 0x118   : > { %v766_v26 = vmul.f32 %v615_v25, %v1623_v50  ;;  %v765_v28 = vmul.f32 %v586_v43, %v1621_v53 }
 0x11a   : > { %v804_v29 = vadd.f32 %v766_v26, %v758_v46  ;;  %v797_v35 = vadd.f32 %v765_v28, %v757_v32  ;;  %v748_v46 = vadd.f32 %v747_v10, %v746_v1  ;;  %v736_v28 = vadd.f32 %v735_v21, %v734_v41 }
 0x11c   : > { %v805_v36 = vrot.slane %v804_v29, 4  ;;  %v798_v61 = vrot.slane %v797_v35, 4 }
 0x11e   : > { %v644_v37 = vpop.f32.mrf.mxu2  ;;  %v673_v48 = vpop.f32.mrf.mxu3  ;;  %v806_v63 = vadd.f32 %v805_v36, %v804_v29  ;;  %v799_v44 = vadd.f32 %v798_v61, %v797_v35  ;;  %v741_v29 = vadd.f32 %v740_v22, %v739_v4 }
 0x11f   : > { %v768_v51 = vmul.f32 %v673_v48, %v1640_v6  ;;  %v589_v52 = vpop.f32.mrf.mxu0  ;;  %v618_v54 = vpop.f32.mrf.mxu1  ;;  %v767_v57 = vmul.f32 %v644_v37, %v1638_v45  ;;  %v749_v48 = vrot.slane %v748_v46, 2 }
 0x120   : > { %v807_v5 = vrot.slane %v806_v63, 2  ;;  %v829_v11 = vmul.f32 %v589_v52, %v1612_v13  ;;  %v830_v18 = vmul.f32 %v618_v54, %v1614_v14  ;;  %v800_v23 = vrot.slane %v799_v44, 2 }
 0x121   : > { %v818_v40 = vadd.f32 %v768_v51, %v760_v56  ;;  %v811_v2 = vadd.f32 %v767_v57, %v759_v62  ;;  %v737_v54 = vrot.slane %v736_v28, 1  ;;  %v742_v58 = vrot.slane %v741_v29, 2 }
 0x122   : > { %v808_v42 = vadd.f32 %v807_v5, %v806_v63  ;;  %v801_v14 = vadd.f32 %v800_v23, %v799_v44  ;;  %v730_v62 = vrot.slane %v729_v27, 1 }
 0x123   : > { %v819_v7 = vrot.slane %v818_v40, 4  ;;  %v812_v17 = vrot.slane %v811_v2, 4  ;;  %v738_v1 = vadd.f32 %v737_v54, %v736_v28  ;;  %v743_v4 = vadd.f32 %v742_v58, %v741_v29 }
 0x124   : > { %v809_v30 = vrot.slane %v808_v42, 1  ;;  %v802_v55 = vrot.slane %v801_v14, 1 }
 0x125   : > { %v820_v24 = vadd.f32 %v819_v7, %v818_v40  ;;  %v813_v26 = vadd.f32 %v812_v17, %v811_v2  ;;  %v750_v40 = vadd.f32 %v749_v48, %v748_v46  ;;  %v744_v21 = vrot.slane %v743_v4, 1 }
 0x126   : > { %v647_v8 = vpop.f32.mrf.mxu2  ;;  %v676_v9 = vpop.f32.mrf.mxu3  ;;  %v803_v2 = vadd.f32 %v802_v55, %v801_v14 }
 0x127   : > { %v591_v12 = vpop.f32.mrf.mxu0  ;;  %v620_v15 = vpop.f32.mrf.mxu1  ;;  %v831_v34 = vmul.f32 %v647_v8, %v1616_v38  ;;  %v832_v35 = vmul.f32 %v676_v9, %v1618_v39  ;;  %v814_v49 = vrot.slane %v813_v26, 2  ;;  %v810_v38 = vadd.f32 %v809_v30, %v808_v42 }
 0x128   : > { %v837_v16 = vmul.f32 %v591_v12, %v1621_v53  ;;  %v838_v19 = vmul.f32 %v620_v15, %v1623_v50  ;;  %v821_v53 = vrot.slane %v820_v24, 2  ;;  %v731_v8 = vadd.f32 %v730_v62, %v729_v27 }
 0x129   : > { %v903_v9 = vsel %vm897_vm2, %v738_v1, %v810_v38  ;;  %v751_v12 = vrot.slane %v750_v40, 1 }
 0x12a   : > { %v869_v43 = vadd.f32 %v837_v16, %v829_v11  ;;  %v876_v25 = vadd.f32 %v838_v19, %v830_v18  ;;  %v822_v59 = vadd.f32 %v821_v53, %v820_v24  ;;  %v902_v18 = vsel %vm897_vm2, %v731_v8, %v803_v2 }
 0x12c   : > { %v870_v13 = vrot.slane %v869_v43, 4  ;;  %v877_v47 = vrot.slane %v876_v25, 4  ;;  %v823_v44 = vrot.slane %v822_v59, 1 }
 0x12e   : > { %v871_v31 = vadd.f32 %v870_v13, %v869_v43  ;;  %v878_v50 = vadd.f32 %v877_v47, %v876_v25  ;;  %v649_v32 = vpop.f32.mrf.mxu2  ;;  %v678_v33 = vpop.f32.mrf.mxu3  ;;  %v824_v22 = vadd.f32 %v823_v44, %v822_v59  ;;  %v752_v25 = vadd.f32 %v751_v12, %v750_v40 }
 0x12f   : > { %v839_v36 = vmul.f32 %v649_v32, %v1638_v45  ;;  %v840_v37 = vmul.f32 %v678_v33, %v1640_v6  ;;  %v815_v45 = vadd.f32 %v814_v49, %v813_v26  ;;  %v745_v47 = vadd.f32 %v744_v21, %v743_v4 }
 0x130   : > { %v872_v51 = vrot.slane %v871_v31, 2  ;;  %v879_v52 = vrot.slane %v878_v50, 2  ;;  %v905_v27 = vsel %vm897_vm2, %v752_v25, %v824_v22 }
 0x131   : > { %v883_v56 = vadd.f32 %v839_v36, %v831_v34  ;;  %v890_v57 = vadd.f32 %v840_v37, %v832_v35  ;;  %v816_v15 = vrot.slane %v815_v45, 1 }
 0x132   : > { %v873_v60 = vadd.f32 %v872_v51, %v871_v31  ;;  %v880_v61 = vadd.f32 %v879_v52, %v878_v50 }
 0x133   : > { %v884_v63 = vrot.slane %v883_v56, 4  ;;  %v891_v39 = vrot.slane %v890_v57, 4  ;;  %v817_v46 = vadd.f32 %v816_v15, %v815_v45 }
 0x134   : > { %v874_v0 = vrot.slane %v873_v60, 1  ;;  %v881_v6 = vrot.slane %v880_v61, 1 }
 0x135   : > { %v885_v3 = vadd.f32 %v884_v63, %v883_v56  ;;  %v892_v41 = vadd.f32 %v891_v39, %v890_v57  ;;  %v904_v29 = vsel %vm897_vm2, %v745_v47, %v817_v46 }
 0x136   : > { %v875_v5 = vadd.f32 %v874_v0, %v873_v60  ;;  %v882_v7 = vadd.f32 %v881_v6, %v880_v61 }
 0x137   : > { %v886_v10 = vrot.slane %v885_v3, 2  ;;  %v893_v11 = vrot.slane %v892_v41, 2 }
 0x138   : > { %v912_v17 = vsel %vm906_vm3, %v903_v9, %v882_v7  ;;  %v911_v23 = vsel %vm906_vm3, %v902_v18, %v875_v5 }
 0x139   : > { %v925_v16 = vrot.slane %v912_v17, 4  ;;  %v887_v19 = vadd.f32 %v886_v10, %v885_v3  ;;  %v894_v20 = vadd.f32 %v893_v11, %v892_v41 }
 0x13b   : > { %v929_v42 = vsel %vm424_vm0, %v911_v23, %v925_v16  ;;  %v888_v24 = vrot.slane %v887_v19, 1  ;;  %v895_v43 = vrot.slane %v894_v20, 1 }
 0x13c   : > { %937 = vst [vmem:[%s1632_s22 + $0x10] sm:$0x77] %v929_v42 }
 0x13d   : > { %v889_v26 = vadd.f32 %v888_v24, %v887_v19  ;;  %v896_v13 = vadd.f32 %v895_v43, %v894_v20 }
 0x13f   : > { %v914_v28 = vsel %vm906_vm3, %v905_v27, %v896_v13  ;;  %v913_v30 = vsel %vm906_vm3, %v904_v29, %v889_v26 }
 0x140   : > { %v926_v14 = vrot.slane %v914_v28, 4 }
 0x142   : > { %v930_v53 = vsel %vm424_vm0, %v913_v30, %v926_v14 }
 0x143   : > { %938 = vst [vmem:[%s1632_s22 + $0x18] sm:$0x77] %v930_v53 }
 0x144 PF: > { %s15_s14 = sadd.s32 1, %s1372_s14   ;;  %s1705_s9 = smov %s1356_s10 }
 0x145   : > { %p12_p0 = scmp.ge.s32.totalorder %s15_s14, 4   ;;  %s1706_s10 = smov %s1360_s11 }
 0x146   : > { %s1707_s11 = smov %s1436_s20  ;;  %s1708_s12 = smov %s1368_s13 }
 0x147   : > { %s1709_s13 = smov %s1711_s16  ;;  %14 = sbr.rel (!%p12_p0) target bundleno = 4 (0x4), region = 71 }
 0x14c   :  { %969 = vsyncpa [#allocation3], 1 }
 0x14d   :  { %971 = vsyncpa [#allocation3 + $0x1], 1 }

</bundles_post_ra>
